<compile_context>
chip_gen: v7x
topology: tpu7x:2x2x1
jax: 0.10.0
libtpu: 0.0.40
codegen_flags: <defaults>
</compile_context>

<pallas_src>
import jax
import jax.numpy as jnp
from jax import lax
from jax.experimental import pallas as pl
from jax.experimental.pallas import tpu as pltpu


# Contract last dim of x (K) with last dim of weight (K):  out[B,O] = x @ W^T
_DIM_NUMS = (((1,), (1,)), ((), ()))


def _linear_single_kernel(x_ref, w_ref, o_ref):
    # Single-shot: whole problem in one MXU pass, result written directly to out.
    o_ref[...] = lax.dot_general(
        x_ref[...],
        w_ref[...],
        dimension_numbers=_DIM_NUMS,
        preferred_element_type=jnp.float32,
    ).astype(o_ref.dtype)


def _linear_tiled_kernel(x_ref, w_ref, o_ref):
    # grid = (O tiles [parallel], K tiles [arbitrary, innermost]).
    # Output block is resident across the K axis; it is f32 in this path, so we
    # accumulate directly into it (no extra scratch buffer).
    @pl.when(pl.program_id(1) == 0)
    def _():
        o_ref[...] = jnp.zeros_like(o_ref)

    o_ref[...] += lax.dot_general(
        x_ref[...],
        w_ref[...],
        dimension_numbers=_DIM_NUMS,
        preferred_element_type=jnp.float32,
    )


def _round_up(n, m):
    return (n + m - 1) // m * m


@jax.jit
def classifier_forward(x, weight):
    """Classifier.forward: x.view(B, -1) @ weight.T  (no bias).

    x:      (B, C, H, W)
    weight: (O, K) with K = C*H*W   (PyTorch nn.Linear layout, used untransposed)
    """
    b = x.shape[0]
    x2d = x.reshape(b, -1)                 # glue reshape in plain JAX
    k = x2d.shape[1]
    o = weight.shape[0]
    assert weight.shape[1] == k, "weight in_features must equal C*H*W"

    itemsize = jnp.dtype(x.dtype).itemsize
    single_bytes = (b * k + o * k + b * o) * itemsize

    if single_bytes <= 48 * 1024 * 1024:
        # Single invocation: no grid, no pipelining, no accumulator scratch.
        # (B stays as-is: padding B to 8 sublanes would add wrapper pad/slice ops
        #  that cost more than the wasted MXU rows at this overhead-bound size.)
        return pl.pallas_call(
            _linear_single_kernel,
            out_shape=jax.ShapeDtypeStruct((b, o), x.dtype),
            compiler_params=pltpu.CompilerParams(
                vmem_limit_bytes=64 * 1024 * 1024,
            ),
        )(x2d, weight)

    # ---- Tiled fallback for large classifier heads ----
    tk = 512                                # K tile (multiple of 128)
    to = 256                                # O tile (lane-dense, multiple of 128)
    kp = _round_up(k, tk)
    op = _round_up(o, to)
    x_p = x2d if kp == k else jnp.pad(x2d, ((0, 0), (0, kp - k)))
    w_p = weight
    if kp != k or op != o:
        w_p = jnp.pad(weight, ((0, op - o), (0, kp - k)))

    out_p = pl.pallas_call(
        _linear_tiled_kernel,
        out_shape=jax.ShapeDtypeStruct((b, op), jnp.float32),
        grid_spec=pltpu.PrefetchScalarGridSpec(
            num_scalar_prefetch=0,
            grid=(op // to, kp // tk),
            in_specs=[
                pl.BlockSpec((b, tk), lambda oi, ki: (0, ki)),    # x slab
                pl.BlockSpec((to, tk), lambda oi, ki: (oi, ki)),  # weight tile (O,K) layout
            ],
            out_specs=pl.BlockSpec((b, to), lambda oi, ki: (0, oi)),
        ),
        compiler_params=pltpu.CompilerParams(
            dimension_semantics=("parallel", "arbitrary"),
            vmem_limit_bytes=64 * 1024 * 1024,
        ),
    )(x_p, w_p)
    return out_p[:, :o].astype(x.dtype)


if __name__ == "__main__":
    # Shapes consistent with the module's forward:
    #   input_channel = C*H*W = 4*16*16 = 1024, output_channel = 32, batch = 2
    B, C, H, W = 2, 4, 16, 16
    K = C * H * W
    O = 32

    key = jax.random.PRNGKey(0)
    kx, kw = jax.random.split(key)

    x = jax.random.normal(kx, (B, C, H, W), dtype=jnp.float32)
    # nn.Linear default init: U(-1/sqrt(K), 1/sqrt(K))
    bound = 1.0 / jnp.sqrt(jnp.float32(K))
    weight = jax.random.uniform(kw, (O, K), minval=-bound, maxval=bound,
                                dtype=jnp.float32)

    out = classifier_forward(x, weight)
    jax.block_until_ready(out)

    # Reference check (pure JAX)
    ref = x.reshape(B, -1) @ weight.T
    assert out.shape == (B, O)
    assert jnp.allclose(out, ref, atol=1e-5, rtol=1e-5), "mismatch vs reference"

    print("KERNEL_OK")
</pallas_src>

<mosaic_0001>
module attributes {stable_mosaic.version = 11 : i64} {
  func.func @_linear_single_kernel(%arg0: memref<2x1024xf32, #tpu.memory_space<vmem>>, %arg1: memref<32x1024xf32, #tpu.memory_space<vmem>>, %arg2: memref<2x32xf32, #tpu.memory_space<vmem>>) attributes {dimension_semantics = [], scalar_prefetch = 0 : i64, scratch_operands = 0 : i64, tpu.core_type = #tpu.core_type<tc>} {
    %c0 = arith.constant 0 : index
    %c0_0 = arith.constant 0 : index
    %0 = vector.load %arg0[%c0, %c0_0] : memref<2x1024xf32, #tpu.memory_space<vmem>>, vector<2x1024xf32>
    %c0_1 = arith.constant 0 : index
    %c0_2 = arith.constant 0 : index
    %1 = vector.load %arg1[%c0_1, %c0_2] : memref<32x1024xf32, #tpu.memory_space<vmem>>, vector<32x1024xf32>
    %cst = arith.constant dense<0.000000e+00> : vector<2x32xf32>
    %2 = tpu.matmul %0, %1, %cst {dimension_numbers = #tpu.dot_dimension_numbers<[1], [1], [0], [0], [0, 0, 1, 0], [], []>} : vector<2x1024xf32>, vector<32x1024xf32>, vector<2x32xf32> -> vector<2x32xf32>
    %c0_3 = arith.constant 0 : index
    %c0_4 = arith.constant 0 : index
    %3 = vector.load %arg2[%c0_3, %c0_4] : memref<2x32xf32, #tpu.memory_space<vmem>>, vector<2x32xf32>
    tpu.vector_store %arg2[%c0_3, %c0_4], %2 {strides = array<i32>} : memref<2x32xf32, #tpu.memory_space<vmem>>, vector<2x32xf32>,
    return
  }
}

</mosaic_0001>

<bundles_post_ra>
// kernel: classifier_forward.1
= control target key start
LH: loop header
LB: loop body
LE: loop exit
PB: predicated region body
PF: predicated region fallthrough
CT: control target
= control target key end

     0   :  { %7 = vsyncpa [#allocation3], 0  ;;  %s595_s0 = inlined_call_operand.hbm [shape: f32[2,1024], index: 0, kind: input, shape index: {}]   ;;  %s596_s1 = inlined_call_operand.hbm [shape: f32[32,1024], index: 1, kind: input, shape index: {}]   ;;  %s597_s2 = inlined_call_operand.hbm [shape: f32[2,32], index: 2, kind: output, shape index: {}]  }
   0x1   :  { %8 = vsyncpa [#allocation6], 0 }
   0x2   :  { %9 = vsyncpa [#allocation4], 0  ;;  %s531_s9 = smov [#allocation2]   ;;  %s532_s11 = smov [#allocation5]  }
   0x3   :  { %s16_s10 = sshll.u32 %s531_s9, 4  ;;  %s25_s12 = sshll.u32 %s532_s11, 4  ;;  %s17_s10 = int_to_ptr.vmem [resolvable:$true] %s16_s10  ;;  %s552_s12 = int_to_ptr.vmem [resolvable:$true] %s25_s12 }
   0x4   :  { %s459_s15 = scalar_lea.hbm %s595_s0, 256 }
   0x5   :  { %p460_p0 = scmp.ne.s32.totalorder %s595_s0, %s459_s15  ;;  %p463_p1 = scmp.lt.u32.totalorder %s459_s15, %s595_s0 }
   0x7   :  { %p465_p2 = pnand %p463_p1, %p460_p0 }
   0x9   :  { %468 = shalt.err (!%p465_p2)
}
   0xa   :  { %s469_s20 = scalar_lea.vmem %s17_s10, 256  ;;  %p474_p4 = scmp.lt.s32.totalorder %s17_s10, %s17_s10 }
   0xb   :  { %p470_p3 = scmp.ne.s32.totalorder %s17_s10, %s469_s20  ;;  %p475_p5 = scmp.lt.s32.totalorder %s469_s20, %s469_s20 }
   0xd   :  { %p476_p6 = por %p475_p5, %p474_p4 }
   0xf   :  { %p477_p7 = pnand %p476_p6, %p470_p3 }
  0x11   :  { %480 = shalt.err (!%p477_p7)
}
  0x12   :  { %19 = dma.hbm_to_vmem [thread:$0]  %s595_s0, 256, %s17_s10, [#allocation3]  }
  0x13   :  { %s481_s25 = scalar_lea.hbm %s596_s1, 4096 }
  0x14   :  { %p482_p8 = scmp.ne.s32.totalorder %s596_s1, %s481_s25  ;;  %p485_p9 = scmp.lt.u32.totalorder %s481_s25, %s596_s1 }
  0x16   :  { %p487_p10 = pnand %p485_p9, %p482_p8 }
  0x18   :  { %490 = shalt.err (!%p487_p10)
}
  0x19   :  { %s491_s30 = scalar_lea.vmem %s552_s12, 4096  ;;  %p496_p12 = scmp.lt.s32.totalorder %s552_s12, %s552_s12 }
  0x1a   :  { %p492_p11 = scmp.ne.s32.totalorder %s552_s12, %s491_s30  ;;  %p497_p13 = scmp.lt.s32.totalorder %s491_s30, %s491_s30 }
  0x1c   :  { %p498_p0 = por %p497_p13, %p496_p12 }
  0x1e   :  { %p499_p1 = pnand %p498_p0, %p492_p11 }
  0x20   :  { %502 = shalt.err (!%p499_p1)
}
  0x21   :  { %s533_s0 = smov 1024   ;;  %s534_s3 = smov 64  }
  0x22   :  { %31 = dma.hbm_to_vmem [thread:$0]  %s596_s1, 4096, %s552_s12, [#allocation6], %s533_s0, %s533_s0, %s534_s3  }
  0x23   :  { %525 = dma.done.wait [#allocation3], 256  }
  0x24   :  { %526 = vsyncadd [#allocation3], 4294967040 }
  0x25   :  { %527 = dma.done.wait [#allocation6], 4096  }
  0x26   :  { %528 = vsyncadd [#allocation6], 4294963200  ;;  %v535_v0 = vmov 1983009808   ;;  %v78_v2 = vlaneseq  ;;  %v41_v5 = vld [vmem:[#allocation5 + $0x8] sm:$0xff]  ;;  %v40_v10 = vld [vmem:[#allocation5] sm:$0xff] }
  0x27   :  { %v76_v1 = vunpack.c.l.s4 %v535_v0  ;;  %v49_v6 = vld [vmem:[#allocation5 + $0x48] sm:$0xff]  ;;  %v48_v11 = vld [vmem:[#allocation5 + $0x40] sm:$0xff]  ;;  %v38_v28 = vld [vmem:[#allocation2] sm:$0xff]  ;;  %s536_s1 = smov [#allocation7]   ;;  %vm396_vm0 = vcmask 254976  }
  0x28   :  { %v79_v4 = vshrl.u32 %v78_v2, 7  ;;  %v45_v7 = vld [vmem:[#allocation5 + $0x28] sm:$0xff]  ;;  %v414_v8 = vpack.c.bf16 %v49_v6, %v41_v5  ;;  %v416_v13 = vpack.c.bf16 %v48_v11, %v40_v10  ;;  %v44_v14 = vld [vmem:[#allocation5 + $0x20] sm:$0xff]  ;;  %v43_v30 = vld [vmem:[#allocation5 + $0x18] sm:$0xff]  ;;  %v74_v41 = vcombine.high %v38_v28, %v38_v28  ;;  %s404_s6 = sshll.u32 %s536_s1, 4  ;;  %s405_s6 = int_to_ptr.vmem [resolvable:$true] %s404_s6 }
  0x29   :  { %v77_v3 = vunpack.c.0.s8 %v76_v1  ;;  %v53_v9 = vld [vmem:[#allocation5 + $0x68] sm:$0xff]  ;;  %v52_v15 = vld [vmem:[#allocation5 + $0x60] sm:$0xff]  ;;  %v51_v31 = vld [vmem:[#allocation5 + $0x58] sm:$0xff]  ;;  %s503_s7 = scalar_lea.vmem %s405_s6, 32  ;;  %p508_p3 = scmp.lt.s32.totalorder %s405_s6, %s405_s6 }
  0x2a   :  { %v430_v12 = vpack.c.bf16 %v53_v9, %v45_v7  ;;  %v57_v16 = vld [vmem:[#allocation5 + $0x88] sm:$0xff]  ;;  %415 = vmatprep.subr.bf16.mxu1 %v414_v8  ;;  %v432_v18 = vpack.c.bf16 %v52_v15, %v44_v14  ;;  %v56_v24 = vld [vmem:[#allocation5 + $0x80] sm:$0xff]  ;;  %v39_v32 = vld [vmem:[#allocation2 + $0x8] sm:$0xff]  ;;  %v422_v39 = vpack.c.bf16 %v51_v31, %v43_v30  ;;  %p504_p2 = scmp.ne.s32.totalorder %s405_s6, %s503_s7  ;;  %p509_p4 = scmp.lt.s32.totalorder %s503_s7, %s503_s7 }
  0x2b   :  { %v80_v17 = vsub.s32 %v77_v3, %v79_v4  ;;  %v65_v19 = vld [vmem:[#allocation5 + $0xc8] sm:$0xff]  ;;  %417 = vmatpush1.bf16.xpose.msra.mxu1 %v416_v13  ;;  %v64_v25 = vld [vmem:[#allocation5 + $0xc0] sm:$0xff]  ;;  %v47_v34 = vld [vmem:[#allocation5 + $0x38] sm:$0xff]  ;;  %v91_v43 = vcombine.high %v39_v32, %v39_v32 }
  0x2c   :  { %v61_v20 = vld [vmem:[#allocation5 + $0xa8] sm:$0xff]  ;;  %431 = vmatprep.subr.bf16.mxu0 %v430_v12  ;;  %v418_v22 = vpack.c.bf16 %v65_v19, %v57_v16  ;;  %v60_v26 = vld [vmem:[#allocation5 + $0xa0] sm:$0xff]  ;;  %v55_v35 = vld [vmem:[#allocation5 + $0x78] sm:$0xff]  ;;  %v420_v36 = vpack.c.bf16 %v64_v25, %v56_v24  ;;  %p510_p5 = por %p509_p4, %p508_p3 }
  0x2d   :  { %v69_v21 = vld [vmem:[#allocation5 + $0xe8] sm:$0xff]  ;;  %433 = vmatpush1.bf16.xpose.msra.mxu0 %v432_v18  ;;  %v68_v27 = vld [vmem:[#allocation5 + $0xe0] sm:$0xff]  ;;  %v81_v29 = vrot.slane %v38_v28, %v80_v17  ;;  %v98_v33 = vrot.slane %v39_v32, %v80_v17  ;;  %v438_v42 = vpack.c.bf16 %v55_v35, %v47_v34  ;;  %v42_v44 = vld [vmem:[#allocation5 + $0x10] sm:$0xff]  ;;  %v88_v50 = vrot.slane %v74_v41, %v80_v17 }
  0x2e   :  { %v434_v23 = vpack.c.bf16 %v69_v21, %v61_v20  ;;  %419 = vmatprep.subr.bf16.mxu1 %v418_v22  ;;  %v436_v38 = vpack.c.bf16 %v68_v27, %v60_v26  ;;  %v50_v45 = vld [vmem:[#allocation5 + $0x50] sm:$0xff]  ;;  %v59_v48 = vld [vmem:[#allocation5 + $0x98] sm:$0xff]  ;;  %v105_v53 = vrot.slane %v91_v43, %v80_v17  ;;  %p511_p6 = pnand %p510_p5, %p504_p2 }
  0x2f   :  { %v89_v37 = vcombine.high %v81_v29, %v81_v29  ;;  %v106_v40 = vcombine.high %v98_v33, %v98_v33  ;;  %v46_v46 = vld [vmem:[#allocation5 + $0x30] sm:$0xff]  ;;  %v67_v49 = vld [vmem:[#allocation5 + $0xd8] sm:$0xff]  ;;  %v424_v54 = vpack.c.bf16 %v50_v45, %v42_v44  ;;  %v90_v58 = vcombine.high %v88_v50, %v88_v50 }
  0x30   :  { %435 = vmatprep.subr.bf16.mxu0 %v434_v23  ;;  %v54_v47 = vld [vmem:[#allocation5 + $0x70] sm:$0xff]  ;;  %v63_v51 = vld [vmem:[#allocation5 + $0xb8] sm:$0xff]  ;;  %v426_v56 = vpack.c.bf16 %v67_v49, %v59_v48  ;;  %v107_v59 = vcombine.high %v105_v53, %v105_v53 }
  0x31   :  { %180 = vmatprep.mubr.f32.mxu1 %v89_v37  ;;  %320 = vmatprep.mubr.f32.mxu0 %v106_v40  ;;  %v71_v52 = vld [vmem:[#allocation5 + $0xf8] sm:$0xff]  ;;  %v440_v55 = vpack.c.bf16 %v54_v47, %v46_v46  ;;  %v58_v60 = vld [vmem:[#allocation5 + $0x90] sm:$0xff] }
  0x32   :  { %v442_v57 = vpack.c.bf16 %v71_v52, %v63_v51  ;;  %v66_v61 = vld [vmem:[#allocation5 + $0xd0] sm:$0xff] }
  0x33   :  { %421 = vmatpush1.bf16.xpose.msra.mxu1 %v420_v36  ;;  %v62_v62 = vld [vmem:[#allocation5 + $0xb0] sm:$0xff]  ;;  %v428_v0 = vpack.c.bf16 %v66_v61, %v58_v60 }
  0x34   :  { %423 = vmatprep.subr.bf16.mxu1 %v422_v39  ;;  %v70_v63 = vld [vmem:[#allocation5 + $0xf0] sm:$0xff] }
  0x35   :  { %437 = vmatpush1.bf16.xpose.msra.mxu0 %v436_v38  ;;  %v444_v1 = vpack.c.bf16 %v70_v63, %v62_v62 }
  0x36   :  { %439 = vmatprep.subr.bf16.mxu0 %v438_v42 }
  0x3a   :  { %181 = vmatmul.mubr.f32.vlgmr.msra.gmra.mrb[0].mxu1 %v81_v29 }
  0x3b   :  { %425 = vmatpush1.bf16.xpose.msra.mxu1 %v424_v54  ;;  %250 = vmatprep.mubr.f32.mxu1 %v90_v58 }
  0x3c   :  { %321 = vmatmul.mubr.f32.vlgmr.msra.gmra.mrb[0].mxu0 %v98_v33  ;;  %427 = vmatprep.subr.bf16.mxu1 %v426_v56 }
  0x3d   :  { %441 = vmatpush1.bf16.xpose.msra.mxu0 %v440_v55  ;;  %390 = vmatprep.mubr.f32.mxu0 %v107_v59 }
  0x3e   :  { %443 = vmatprep.subr.bf16.mxu0 %v442_v57 }
  0x43   :  { %429 = vmatpush1.bf16.xpose.msra.mxu1 %v428_v0 }
  0x45   :  { %445 = vmatpush1.bf16.xpose.msra.mxu0 %v444_v1 }
  0x4a   :  { %251 = vmatmul.mubr.f32.vlgmr.msra.gmra.mrb[0].mxu1 %v88_v50 }
  0x4c   :  { %391 = vmatmul.mubr.f32.vlgmr.msra.gmra.mrb[0].mxu0 %v105_v53 }
 0x11d   :  { %v252_v2 = vpop.f32.mrb[0].mxu1 }
 0x11e   :  { %v254_v4 = vpop.f32.mrb[1].mxu1 }
 0x11f   :  { %v392_v3 = vpop.f32.mrb[0].mxu0 }
 0x120   :  { %v446_v5 = vadd.f32 %v392_v3, %v252_v2  ;;  %v394_v6 = vpop.f32.mrb[1].mxu0 }
 0x122   :  { %397 = vst.msk [vmem:[#allocation7] sm:$0x3] %vm396_vm0, %v446_v5 }
 0x123   :  { %514 = shalt.err (!%p511_p6)
}
 0x124   :  { %s515_s10 = scalar_lea.hbm %s597_s2, 32 }
 0x125   :  { %p516_p7 = scmp.ne.s32.totalorder %s597_s2, %s515_s10  ;;  %p519_p8 = scmp.lt.u32.totalorder %s515_s10, %s597_s2 }
 0x127   :  { %p521_p9 = pnand %p519_p8, %p516_p7 }
 0x129   :  { %524 = shalt.err (!%p521_p9)
}
 0x12a   :  { %407 = dma.vmem_to_hbm [thread:$0]  %s405_s6, 32, %s597_s2, [#allocation4]  }
 0x12b   :  { %529 = dma.done.wait [#allocation4], 32  }
 0x12c   :  { %530 = vsyncadd [#allocation4], 4294967264 }
 0x12d   :  { %411 = vsyncpa [#allocation3], 1 }
 0x12e   :  { %412 = vsyncpa [#allocation6], 1 }
 0x12f   :  { %413 = vsyncpa [#allocation4], 1 }

</bundles_post_ra>
